<compile_context>
chip_gen: v7x
topology: tpu7x:2x2x1
jax: 0.10.0
libtpu: 0.0.40
codegen_flags: <defaults>
</compile_context>

<pallas_src>
import jax
import jax.numpy as jnp
from jax.experimental import pallas as pl
from jax.experimental.pallas import tpu as pltpu


_TR = 8  # rows gathered per grid step (one full f32 sublane group)
_VMEM_TABLE_BUDGET_BYTES = 8 * 1024 * 1024  # keep table VMEM-resident below this


def _gather_rows_kernel(ids_ref, table_ref, out_ref):
    """Gather _TR table rows per grid step from the VMEM-resident table.

    ids_ref   : (N_pad,)      int32  SMEM (scalar prefetch)
    table_ref : (V, 1, D)     f32    VMEM — whole table, resident across steps
    out_ref   : (_TR, 1, D)   f32    VMEM — output block for grid step i
    """
    base = pl.program_id(0) * _TR
    for r in range(_TR):  # static unroll: 8 leading-axis loads + stores
        idx = ids_ref[base + r]          # scalar read from SMEM
        out_ref[r] = table_ref[idx]      # dynamic leading-axis row copy in VMEM


@jax.jit
def _encode_resident(ids_padded, table3):
    """ids_padded: (N_pad,) int32, N_pad % _TR == 0; table3: (V, 1, D) f32.

    Returns (N_pad, D) f32 = table[ids_padded, :].
    """
    n_pad = ids_padded.shape[0]
    v, _, d = table3.shape

    out3 = pl.pallas_call(
        _gather_rows_kernel,
        out_shape=jax.ShapeDtypeStruct((n_pad, 1, d), table3.dtype),
        grid_spec=pltpu.PrefetchScalarGridSpec(
            num_scalar_prefetch=1,
            grid=(n_pad // _TR,),
            in_specs=[
                # Whole table as a single block with a constant index_map:
                # DMA'd HBM->VMEM once, then reused by every grid step.
                pl.BlockSpec((v, 1, d), lambda i, ids: (0, 0, 0)),
            ],
            out_specs=pl.BlockSpec((_TR, 1, d), lambda i, ids: (i, 0, 0)),
        ),
        compiler_params=pltpu.CompilerParams(
            # Output blocks are independent -> v7x's two TensorCores may split
            # the grid; harmless no-op on single-TC v5e/v6e.
            dimension_semantics=("parallel",),
            vmem_limit_bytes=32 * 1024 * 1024,
        ),
        cost_estimate=pl.CostEstimate(
            flops=0,
            transcendentals=0,
            bytes_accessed=v * d * 4 + n_pad * d * 4 + n_pad * 4,
        ),
    )(ids_padded, table3)

    return out3.reshape(n_pad, d)


class NumeralEncoder:
    """JAX/Pallas port of the PyTorch NumeralEncoder base class."""

    def __init__(self, output_size, train_values, all_values, *, key):
        self.output_size = output_size
        self.train_values = train_values
        self.all_values = all_values
        self.value_vocab = dict(zip(all_values, range(0, len(all_values))))

        # Deterministic parameter init: one embedding row per known value.
        self.embedding_table = (
            jax.random.normal(key, (len(all_values), output_size), jnp.float32)
            * 0.02
        )
        # 3-D view (V, 1, D): the kernel's dynamic gather indexes the untiled
        # leading axis; last two block dims equal the full array dims, so the
        # (8,128) block rule is satisfied without any lane padding.
        self._table3 = self.embedding_table.reshape(
            len(all_values), 1, output_size
        )

    # ---- host-side glue (dict lookups, same as the PyTorch reference) ----
    def values2ids(self, values):
        # Raises KeyError for unknown values, like the PyTorch reference.
        return [self.value_vocab[v] for v in values]

    def value2id(self, value):
        return self.value_vocab[value]

    # ---- forward: the Pallas hot path ----
    def forward(self, x):
        """x: list of raw numeral values -> (len(x), output_size) embeddings."""
        n = len(x)
        if n == 0:
            return jnp.zeros((0, self.output_size), jnp.float32)

        ids = jnp.asarray(self.values2ids(x), dtype=jnp.int32)

        table_bytes = self.embedding_table.size * 4
        if table_bytes > _VMEM_TABLE_BUDGET_BYTES:
            # TODO(synk): batched manual-DMA (pl.ANY + pltpu.make_async_copy)
            # gather for tables too large to keep VMEM-resident.
            return jnp.take(self.embedding_table, ids, axis=0)

        # Pad the row count up to a multiple of _TR (pad ids are 0 — a valid
        # row) and slice the padding back off after the kernel.
        n_pad = pl.cdiv(n, _TR) * _TR
        ids_padded = jnp.pad(ids, (0, n_pad - n))
        out = _encode_resident(ids_padded, self._table3)
        return out[:n]

    def get_embeddings(self):
        return self.forward(self.all_values)


if __name__ == "__main__":
    key = jax.random.PRNGKey(0)

    # Small, deterministic setup: vocab V = 64, output_size = 32,
    # N = 40 query values (not a multiple of 8 to exercise row padding).
    all_values = [float(i) for i in range(64)]
    train_values = all_values[:40]
    output_size = 32

    enc = NumeralEncoder(output_size, train_values, all_values, key=key)

    out = jax.block_until_ready(enc.forward(train_values))       # (40, 32)
    all_emb = jax.block_until_ready(enc.get_embeddings())        # (64, 32)

    # Sanity check against a plain-JAX reference (pure gather — bit exact).
    ref = enc.embedding_table[jnp.asarray(enc.values2ids(train_values))]
    ref_all = enc.embedding_table[jnp.asarray(enc.values2ids(all_values))]
    assert out.shape == (len(train_values), output_size)
    assert all_emb.shape == (len(all_values), output_size)
    assert jnp.array_equal(out, ref), "mismatch vs reference gather"
    assert jnp.array_equal(all_emb, ref_all), "mismatch vs reference gather (all)"

    # Empty-input edge case.
    assert enc.forward([]).shape == (0, output_size)

    print("KERNEL_OK")
</pallas_src>

<mosaic_0001>
module attributes {stable_mosaic.version = 11 : i64} {
  func.func @_gather_rows_kernel(%arg0: i32, %arg1: memref<40xi32, #tpu.memory_space<smem>>, %arg2: memref<64x1x32xf32, #tpu.memory_space<vmem>>, %arg3: memref<8x1x32xf32, #tpu.memory_space<vmem>>) attributes {dimension_semantics = [#tpu.dimension_semantics<parallel>], iteration_bounds = array<i64: 5>, scalar_prefetch = 1 : i64, scratch_operands = 0 : i64, tpu.core_type = #tpu.core_type<tc>, window_params = [{pipeline_mode = #tpu.pipeline_mode<synchronous>, transform_indices = @transform_0, window_bounds = array<i64: 64, 1, 32>}, {transform_indices = @transform_1, window_bounds = array<i64: 8, 1, 32>}]} {
    %c8_i32 = arith.constant 8 : i32
    %0 = arith.muli %arg0, %c8_i32 : i32
    %c0_i32 = arith.constant 0 : i32
    %1 = arith.addi %0, %c0_i32 : i32
    %2 = arith.index_cast %1 : i32 to index
    %3 = memref.load %arg1[%2] : memref<40xi32, #tpu.memory_space<smem>>
    %4 = arith.index_cast %3 : i32 to index
    %c0 = arith.constant 0 : index
    %c0_0 = arith.constant 0 : index
    %5 = vector.load %arg2[%4, %c0, %c0_0] : memref<64x1x32xf32, #tpu.memory_space<vmem>>, vector<1x1x32xf32>
    %6 = vector.shape_cast %5 : vector<1x1x32xf32> to vector<1x32xf32>
    %c0_1 = arith.constant 0 : index
    %c0_2 = arith.constant 0 : index
    %c0_3 = arith.constant 0 : index
    %7 = vector.load %arg3[%c0_1, %c0_2, %c0_3] : memref<8x1x32xf32, #tpu.memory_space<vmem>>, vector<1x1x32xf32>
    %8 = vector.shape_cast %7 : vector<1x1x32xf32> to vector<1x32xf32>
    %9 = vector.shape_cast %6 : vector<1x32xf32> to vector<1x1x32xf32>
    tpu.vector_store %arg3[%c0_1, %c0_2, %c0_3], %9 {strides = array<i32>} : memref<8x1x32xf32, #tpu.memory_space<vmem>>, vector<1x1x32xf32>,
    %c1_i32 = arith.constant 1 : i32
    %10 = arith.addi %0, %c1_i32 : i32
    %11 = arith.index_cast %10 : i32 to index
    %12 = memref.load %arg1[%11] : memref<40xi32, #tpu.memory_space<smem>>
    %13 = arith.index_cast %12 : i32 to index
    %c0_4 = arith.constant 0 : index
    %c0_5 = arith.constant 0 : index
    %14 = vector.load %arg2[%13, %c0_4, %c0_5] : memref<64x1x32xf32, #tpu.memory_space<vmem>>, vector<1x1x32xf32>
    %15 = vector.shape_cast %14 : vector<1x1x32xf32> to vector<1x32xf32>
    %c1 = arith.constant 1 : index
    %c0_6 = arith.constant 0 : index
    %c0_7 = arith.constant 0 : index
    %16 = vector.load %arg3[%c1, %c0_6, %c0_7] : memref<8x1x32xf32, #tpu.memory_space<vmem>>, vector<1x1x32xf32>
    %17 = vector.shape_cast %16 : vector<1x1x32xf32> to vector<1x32xf32>
    %18 = vector.shape_cast %15 : vector<1x32xf32> to vector<1x1x32xf32>
    tpu.vector_store %arg3[%c1, %c0_6, %c0_7], %18 {strides = array<i32>} : memref<8x1x32xf32, #tpu.memory_space<vmem>>, vector<1x1x32xf32>,
    %c2_i32 = arith.constant 2 : i32
    %19 = arith.addi %0, %c2_i32 : i32
    %20 = arith.index_cast %19 : i32 to index
    %21 = memref.load %arg1[%20] : memref<40xi32, #tpu.memory_space<smem>>
    %22 = arith.index_cast %21 : i32 to index
    %c0_8 = arith.constant 0 : index
    %c0_9 = arith.constant 0 : index
    %23 = vector.load %arg2[%22, %c0_8, %c0_9] : memref<64x1x32xf32, #tpu.memory_space<vmem>>, vector<1x1x32xf32>
    %24 = vector.shape_cast %23 : vector<1x1x32xf32> to vector<1x32xf32>
    %c2 = arith.constant 2 : index
    %c0_10 = arith.constant 0 : index
    %c0_11 = arith.constant 0 : index
    %25 = vector.load %arg3[%c2, %c0_10, %c0_11] : memref<8x1x32xf32, #tpu.memory_space<vmem>>, vector<1x1x32xf32>
    %26 = vector.shape_cast %25 : vector<1x1x32xf32> to vector<1x32xf32>
    %27 = vector.shape_cast %24 : vector<1x32xf32> to vector<1x1x32xf32>
    tpu.vector_store %arg3[%c2, %c0_10, %c0_11], %27 {strides = array<i32>} : memref<8x1x32xf32, #tpu.memory_space<vmem>>, vector<1x1x32xf32>,
    %c3_i32 = arith.constant 3 : i32
    %28 = arith.addi %0, %c3_i32 : i32
    %29 = arith.index_cast %28 : i32 to index
    %30 = memref.load %arg1[%29] : memref<40xi32, #tpu.memory_space<smem>>
    %31 = arith.index_cast %30 : i32 to index
    %c0_12 = arith.constant 0 : index
    %c0_13 = arith.constant 0 : index
    %32 = vector.load %arg2[%31, %c0_12, %c0_13] : memref<64x1x32xf32, #tpu.memory_space<vmem>>, vector<1x1x32xf32>
    %33 = vector.shape_cast %32 : vector<1x1x32xf32> to vector<1x32xf32>
    %c3 = arith.constant 3 : index
    %c0_14 = arith.constant 0 : index
    %c0_15 = arith.constant 0 : index
    %34 = vector.load %arg3[%c3, %c0_14, %c0_15] : memref<8x1x32xf32, #tpu.memory_space<vmem>>, vector<1x1x32xf32>
    %35 = vector.shape_cast %34 : vector<1x1x32xf32> to vector<1x32xf32>
    %36 = vector.shape_cast %33 : vector<1x32xf32> to vector<1x1x32xf32>
    tpu.vector_store %arg3[%c3, %c0_14, %c0_15], %36 {strides = array<i32>} : memref<8x1x32xf32, #tpu.memory_space<vmem>>, vector<1x1x32xf32>,
    %c4_i32 = arith.constant 4 : i32
    %37 = arith.addi %0, %c4_i32 : i32
    %38 = arith.index_cast %37 : i32 to index
    %39 = memref.load %arg1[%38] : memref<40xi32, #tpu.memory_space<smem>>
    %40 = arith.index_cast %39 : i32 to index
    %c0_16 = arith.constant 0 : index
    %c0_17 = arith.constant 0 : index
    %41 = vector.load %arg2[%40, %c0_16, %c0_17] : memref<64x1x32xf32, #tpu.memory_space<vmem>>, vector<1x1x32xf32>
    %42 = vector.shape_cast %41 : vector<1x1x32xf32> to vector<1x32xf32>
    %c4 = arith.constant 4 : index
    %c0_18 = arith.constant 0 : index
    %c0_19 = arith.constant 0 : index
    %43 = vector.load %arg3[%c4, %c0_18, %c0_19] : memref<8x1x32xf32, #tpu.memory_space<vmem>>, vector<1x1x32xf32>
    %44 = vector.shape_cast %43 : vector<1x1x32xf32> to vector<1x32xf32>
    %45 = vector.shape_cast %42 : vector<1x32xf32> to vector<1x1x32xf32>
    tpu.vector_store %arg3[%c4, %c0_18, %c0_19], %45 {strides = array<i32>} : memref<8x1x32xf32, #tpu.memory_space<vmem>>, vector<1x1x32xf32>,
    %c5_i32 = arith.constant 5 : i32
    %46 = arith.addi %0, %c5_i32 : i32
    %47 = arith.index_cast %46 : i32 to index
    %48 = memref.load %arg1[%47] : memref<40xi32, #tpu.memory_space<smem>>
    %49 = arith.index_cast %48 : i32 to index
    %c0_20 = arith.constant 0 : index
    %c0_21 = arith.constant 0 : index
    %50 = vector.load %arg2[%49, %c0_20, %c0_21] : memref<64x1x32xf32, #tpu.memory_space<vmem>>, vector<1x1x32xf32>
    %51 = vector.shape_cast %50 : vector<1x1x32xf32> to vector<1x32xf32>
    %c5 = arith.constant 5 : index
    %c0_22 = arith.constant 0 : index
    %c0_23 = arith.constant 0 : index
    %52 = vector.load %arg3[%c5, %c0_22, %c0_23] : memref<8x1x32xf32, #tpu.memory_space<vmem>>, vector<1x1x32xf32>
    %53 = vector.shape_cast %52 : vector<1x1x32xf32> to vector<1x32xf32>
    %54 = vector.shape_cast %51 : vector<1x32xf32> to vector<1x1x32xf32>
    tpu.vector_store %arg3[%c5, %c0_22, %c0_23], %54 {strides = array<i32>} : memref<8x1x32xf32, #tpu.memory_space<vmem>>, vector<1x1x32xf32>,
    %c6_i32 = arith.constant 6 : i32
    %55 = arith.addi %0, %c6_i32 : i32
    %56 = arith.index_cast %55 : i32 to index
    %57 = memref.load %arg1[%56] : memref<40xi32, #tpu.memory_space<smem>>
    %58 = arith.index_cast %57 : i32 to index
    %c0_24 = arith.constant 0 : index
    %c0_25 = arith.constant 0 : index
    %59 = vector.load %arg2[%58, %c0_24, %c0_25] : memref<64x1x32xf32, #tpu.memory_space<vmem>>, vector<1x1x32xf32>
    %60 = vector.shape_cast %59 : vector<1x1x32xf32> to vector<1x32xf32>
    %c6 = arith.constant 6 : index
    %c0_26 = arith.constant 0 : index
    %c0_27 = arith.constant 0 : index
    %61 = vector.load %arg3[%c6, %c0_26, %c0_27] : memref<8x1x32xf32, #tpu.memory_space<vmem>>, vector<1x1x32xf32>
    %62 = vector.shape_cast %61 : vector<1x1x32xf32> to vector<1x32xf32>
    %63 = vector.shape_cast %60 : vector<1x32xf32> to vector<1x1x32xf32>
    tpu.vector_store %arg3[%c6, %c0_26, %c0_27], %63 {strides = array<i32>} : memref<8x1x32xf32, #tpu.memory_space<vmem>>, vector<1x1x32xf32>,
    %c7_i32 = arith.constant 7 : i32
    %64 = arith.addi %0, %c7_i32 : i32
    %65 = arith.index_cast %64 : i32 to index
    %66 = memref.load %arg1[%65] : memref<40xi32, #tpu.memory_space<smem>>
    %67 = arith.index_cast %66 : i32 to index
    %c0_28 = arith.constant 0 : index
    %c0_29 = arith.constant 0 : index
    %68 = vector.load %arg2[%67, %c0_28, %c0_29] : memref<64x1x32xf32, #tpu.memory_space<vmem>>, vector<1x1x32xf32>
    %69 = vector.shape_cast %68 : vector<1x1x32xf32> to vector<1x32xf32>
    %c7 = arith.constant 7 : index
    %c0_30 = arith.constant 0 : index
    %c0_31 = arith.constant 0 : index
    %70 = vector.load %arg3[%c7, %c0_30, %c0_31] : memref<8x1x32xf32, #tpu.memory_space<vmem>>, vector<1x1x32xf32>
    %71 = vector.shape_cast %70 : vector<1x1x32xf32> to vector<1x32xf32>
    %72 = vector.shape_cast %69 : vector<1x32xf32> to vector<1x1x32xf32>
    tpu.vector_store %arg3[%c7, %c0_30, %c0_31], %72 {strides = array<i32>} : memref<8x1x32xf32, #tpu.memory_space<vmem>>, vector<1x1x32xf32>,
    return
  }
  func.func @transform_0(%arg0: i32, %arg1: memref<40xi32, #tpu.memory_space<smem>>) -> (i32, i32, i32) {
    %c0_i32 = arith.constant 0 : i32
    %c0_i32_0 = arith.constant 0 : i32
    %c0_i32_1 = arith.constant 0 : i32
    %c0_i32_2 = arith.constant 0 : i32
    return %c0_i32, %c0_i32_0, %c0_i32_1 : i32, i32, i32
  }
  func.func @transform_1(%arg0: i32, %arg1: memref<40xi32, #tpu.memory_space<smem>>) -> (i32, i32, i32) {
    %c0_i32 = arith.constant 0 : i32
    %c0_i32_0 = arith.constant 0 : i32
    %c0_i32_1 = arith.constant 0 : i32
    return %arg0, %c0_i32, %c0_i32_0 : i32, i32, i32
  }
}

</mosaic_0001>

<bundles_post_ra>
// kernel: _encode_resident.1
= control target key start
LH: loop header
LB: loop body
LE: loop exit
PB: predicated region body
PF: predicated region fallthrough
CT: control target
= control target key end

     0   :  { %s330_s0 = inlined_call_operand.vmem [shape: s32[40], index: 0, kind: input, shape index: {}]   ;;  %s331_s1 = inlined_call_operand.vmem [shape: f32[64,1,32], index: 1, kind: input, shape index: {}]   ;;  %s332_s2 = inlined_call_operand.vmem [shape: f32[40,1,32], index: 2, kind: output, shape index: {}]  }
   0x1   :  { %s7_s11 = sshll.u32 %s330_s0, 4  ;;  %s8_s11 = int_to_ptr.vmem [resolvable:$true] %s7_s11 }
   0x2   :  { %s221_s12 = scalar_lea.vmem %s8_s11, 16  ;;  %p226_p1 = scmp.lt.s32.totalorder %s8_s11, %s8_s11 }
   0x3   :  { %p222_p0 = scmp.ne.s32.totalorder %s8_s11, %s221_s12  ;;  %p227_p2 = scmp.lt.s32.totalorder %s221_s12, %s221_s12 }
   0x5   :  { %p228_p3 = por %p227_p2, %p226_p1 }
   0x7   :  { %p229_p4 = pnand %p228_p3, %p222_p0 }
   0x9   :  { %232 = shalt.err (!%p229_p4)  }
   0xa   :  { %s243_s13 = smov [#allocation3]  }
   0xb   :  { %10 = dma.vmem_to_smem %s8_s11, 16, %s243_s13, [#allocation2] }
   0xc   :  { %237 = dma.done.wait [#allocation2], 16 }
   0xd   :  { %238 = vsyncadd [#allocation2], 4294967280 }
   0xe   :  { %12 = sfence }
   0xf   :  { %s262_s14 = smov 0  }
  0x10 LB: > { %s197_s0 = sadd.s32 4294967295, %s241_s14   ;;  %p200_p5 = scmp.ge.s32.totalorder %s241_s14, 1  ;;  %s241_s14 = sphi %s262_s14, %s18_s14  }
  0x11   : > { %p84_p6 = scmp.lt.s32.totalorder %s241_s14, 6 }
  0x13   : > { %p85_p7 = pnand %p200_p5, %p84_p6 }
  0x14   : > { %s270_s15 = sshll.u32 (!%p85_p7), %s197_s0, 3  ;;  %vm107_vm0 = vcmask (!%p85_p7), 253952  }
  0x15   : > { %88 = sbr.rel (%p85_p7) target bundleno = 41 (0x29), region = 24  ;;  %p99_p8 = scmp.lt.s32.totalorder (!%p85_p7), %s270_s15, 39 }
  0x16   : > { %s104_s16 = sld [smem:[#allocation3 + %s270_s15]] (!%p85_p7)  ;;  %s109_s17 = sadd.s32 (!%p85_p7), 1, %s270_s15 }
  0x17   : > { %s115_s18 = sadd.s32 (!%p85_p7), 2, %s270_s15  ;;  %s110_s20 = sld [smem:[#allocation3 + %s109_s17]] (!%p85_p7) }
  0x18   : > { %s116_s21 = sld [smem:[#allocation3 + %s115_s18]] (!%p85_p7)  ;;  %s121_s25 = sadd.s32 (!%p85_p7), 3, %s270_s15 }
  0x19   : > { %s122_s26 = sld [smem:[#allocation3 + %s121_s25]] (!%p85_p7)  ;;  %s127_s27 = sadd.s32 (!%p85_p7), 4, %s270_s15 }
  0x1a   : > { %s128_s3 = sld [smem:[#allocation3 + %s127_s27]] (!%p85_p7)  ;;  %s133_s4 = sadd.s32 (!%p85_p7), 5, %s270_s15 }
  0x1b   : > { %s139_s5 = sadd.s32 (!%p85_p7), 6, %s270_s15  ;;  %s134_s6 = sld [smem:[#allocation3 + %s133_s4]] (!%p85_p7) }
  0x1c   : > { %s100_s19 = scalar_select %p99_p8, %s270_s15, 39 }
  0x1d   : > { %s105_s30 = scalar_lea.vmem %s331_s1, %s104_s16  ;;  %s140_s7 = sld [smem:[#allocation3 + %s139_s5]] }
  0x1e   : > { %s280_s24 = scalar_lea.vmem %s332_s2, %s100_s19  ;;  %v106_v0 = vld [vmem:[%s105_s30] sm:$0x1]  ;;  %s111_s10 = scalar_lea.vmem %s331_s1, %s110_s20 }
  0x1f   : > { %108 = vst.msk [vmem:[%s280_s24] sm:$0x1] %vm107_vm0, %v106_v0  ;;  %s117_s13 = scalar_lea.vmem %s331_s1, %s116_s21  ;;  %v112_v1 = vld [vmem:[%s111_s10] sm:$0x1]  ;;  %s145_s0 = sadd.s32 7, %s270_s15 }
  0x20   : > { %v118_v2 = vld [vmem:[%s117_s13] sm:$0x1]  ;;  %203 = vst.msk [vmem:[%s280_s24 + $0x1] sm:$0x1] %vm107_vm0, %v112_v1  ;;  %s123_s18 = scalar_lea.vmem %s331_s1, %s122_s26  ;;  %s146_s19 = sld [smem:[#allocation3 + %s145_s0]] }
  0x21   : > { %204 = vst.msk [vmem:[%s280_s24 + $0x2] sm:$0x1] %vm107_vm0, %v118_v2  ;;  %v124_v3 = vld [vmem:[%s123_s18] sm:$0x1]  ;;  %s129_s21 = scalar_lea.vmem %s331_s1, %s128_s3  ;;  %s135_s25 = scalar_lea.vmem %s331_s1, %s134_s6 }
  0x22   : > { %205 = vst.msk [vmem:[%s280_s24 + $0x3] sm:$0x1] %vm107_vm0, %v124_v3  ;;  %v130_v4 = vld [vmem:[%s129_s21] sm:$0x1] }
  0x23   : > { %206 = vst.msk [vmem:[%s280_s24 + $0x4] sm:$0x1] %vm107_vm0, %v130_v4  ;;  %s141_s29 = scalar_lea.vmem %s331_s1, %s140_s7  ;;  %v136_v5 = vld [vmem:[%s135_s25] sm:$0x1] }
  0x24   : > { %v142_v6 = vld [vmem:[%s141_s29] sm:$0x1]  ;;  %207 = vst.msk [vmem:[%s280_s24 + $0x5] sm:$0x1] %vm107_vm0, %v136_v5 }
  0x25   : > { %208 = vst.msk [vmem:[%s280_s24 + $0x6] sm:$0x1] %vm107_vm0, %v142_v6 }
  0x26   : > { %s147_s3 = scalar_lea.vmem %s331_s1, %s146_s19 }
  0x27   : > { %v148_v7 = vld [vmem:[%s147_s3] sm:$0x1] }
  0x28   : > { %209 = vst.msk [vmem:[%s280_s24 + $0x7] sm:$0x1] %vm107_vm0, %v148_v7 }
  0x29 PF: > { %s18_s14 = sadd.s32 1, %s241_s14  }
  0x2a   : > { %p15_p9 = scmp.ge.s32.totalorder %s18_s14, 7  }
  0x2c   :  { %17 = sbr.rel (!%p15_p9) target bundleno = 16 (0x10), region = 66 }

</bundles_post_ra>
